<compile_context>
chip_gen: v7x
topology: tpu7x:2x2x1
jax: 0.10.0
libtpu: 0.0.40
codegen_flags: <defaults>
</compile_context>

<pallas_src>
import functools
import math

import jax
import jax.numpy as jnp
from jax.experimental import pallas as pl
from jax.experimental.pallas import tpu as pltpu


# ----------------------------------------------------------------------------
# Kernel
# ----------------------------------------------------------------------------
def _dc_kernel(*refs, c, soft, exact_expand):
    """Data-consistency blend on one (tr, tw*c) tile.

    Ref order:
      soft : w_ref (SMEM (1,) f32), then the refs below
      hard : m_ref (tr, tw), [oh_ref (tw, tw*c) if c > 1], k_ref, u_ref, o_ref
    """
    if soft:
        w_ref, *refs = refs
    if c > 1:
        m_ref, oh_ref, k_ref, u_ref, o_ref = refs
    else:
        m_ref, k_ref, u_ref, o_ref = refs

    notm = 1.0 - m_ref[...]                              # (tr, tw) f32
    if c > 1:
        # Channel-broadcast of the mask: (tr, tw) -> (tr, tw*c), interleaved.
        # Uses the resident one-hot on the (idle) MXU -- avoids minor-dim
        # reshapes / lane gathers.  Default precision is exact for {0,1}
        # masks; HIGHEST available for arbitrary-valued masks.
        prec = jax.lax.Precision.HIGHEST if exact_expand else None
        notm = jnp.dot(notm, oh_ref[...],
                       preferred_element_type=jnp.float32, precision=prec)

    k = k_ref[...]
    u = u_ref[...]
    if soft:
        w = w_ref[0]                                     # f32 scalar from SMEM
        out = notm * k * (1.0 - w) + u * w
    else:
        out = notm * k + u
    o_ref[...] = out.astype(o_ref.dtype)


# ----------------------------------------------------------------------------
# Tiling helpers
# ----------------------------------------------------------------------------
def _round_up(x, m):
    return ((x + m - 1) // m) * m


def _pick_lane_tile(lanes, cap):
    """Largest multiple-of-128 divisor of `lanes` that is <= cap, else full."""
    if lanes <= cap or lanes % 128 != 0:
        return lanes
    t = cap - cap % 128
    while t >= 128:
        if lanes % t == 0:
            return t
        t -= 128
    return lanes


def _pick_row_tile(rows, lane_bytes, target_bytes):
    """Multiple-of-16 row tile keeping each data block around target_bytes."""
    tr = max(16, (target_bytes // max(1, lane_bytes)) // 16 * 16)
    tr = min(tr, 2048)
    if tr >= rows:
        return rows                      # single full-extent block along rows
    return tr


def _one_hot_expand(tw, c, dtype):
    """(tw, tw*c) matrix with one_hot[r, l] = 1 iff l // c == r."""
    row = jax.lax.broadcasted_iota(jnp.int32, (tw, tw * c), 0)
    col = jax.lax.broadcasted_iota(jnp.int32, (tw, tw * c), 1)
    return (col // c == row).astype(dtype)


def _rows_lanes(shape):
    if len(shape) <= 1:
        return 1, (shape[0] if shape else 1)
    return math.prod(shape[:-2]), shape[-2] * shape[-1]


# ----------------------------------------------------------------------------
# pallas_call wrapper
# ----------------------------------------------------------------------------
def _dc_pallas(m2, k2, u2, *, wm, c, dc_weight=None, exact_expand=False,
               block_target_bytes=1 << 20):
    rows, lanes = k2.shape
    assert lanes == wm * c and m2.shape == (rows, wm)

    # Lane tiling: 128-wide mask tiles when W divides evenly (native MXU shape,
    # tiny resident one-hot); otherwise a full-extent lane block (always legal).
    if c > 1:
        tw = 128 if wm % 128 == 0 else wm
    else:
        tw = _pick_lane_tile(wm, 2048)
    tl = tw * c
    tr = _pick_row_tile(rows, tl * k2.dtype.itemsize, block_target_bytes)
    grid = (pl.cdiv(rows, tr), wm // tw)

    data_spec = pl.BlockSpec((tr, tl), lambda i, j: (i, j))
    mask_spec = pl.BlockSpec((tr, tw), lambda i, j: (i, j))

    soft = dc_weight is not None
    in_specs, args = [], []
    if soft:
        in_specs.append(pl.BlockSpec(memory_space=pltpu.MemorySpace.SMEM))
        args.append(jnp.asarray(dc_weight, jnp.float32).reshape(1))
    in_specs.append(mask_spec)
    args.append(m2)
    if c > 1:
        in_specs.append(pl.BlockSpec((tw, tl), lambda i, j: (0, 0)))  # resident
        args.append(_one_hot_expand(tw, c, jnp.float32))
    in_specs += [data_spec, data_spec]
    args += [k2, u2]

    kernel = functools.partial(_dc_kernel, c=c, soft=soft,
                               exact_expand=exact_expand)
    return pl.pallas_call(
        kernel,
        out_shape=jax.ShapeDtypeStruct((rows, lanes), k2.dtype),
        grid=grid,
        in_specs=in_specs,
        out_specs=data_spec,
        compiler_params=pltpu.CompilerParams(
            dimension_semantics=("parallel", "parallel")),
    )(*args)


def dc_layer2c(k_rec, mask, uk, *, soft=False, dc_weight=None,
               exact_mask_expand=False, block_target_bytes=1 << 20):
    """Pallas forward of DC_layer2c.

    k_rec, uk: same shape.  mask: same shape as k_rec, or k_rec.shape[:-1]
    (then broadcast over the trailing dim, mirroring mask.unsqueeze(-1)).
    """
    assert uk.shape == k_rec.shape
    if soft:
        assert dc_weight is not None, "soft=True requires dc_weight"
    orig_shape = k_rec.shape
    mask = jnp.asarray(mask)
    if mask.ndim < k_rec.ndim:                       # torch: mask.unsqueeze(-1)
        mask = mask[..., None]

    dcw = dc_weight if soft else None
    ch = k_rec.shape[-1] if k_rec.ndim else 1

    if (k_rec.ndim >= 2 and ch > 1
            and mask.shape == k_rec.shape[:-1] + (1,)):
        # Mask broadcasts only over the trailing channel dim (k-space case):
        # fold (..., W, C) -> (rows, W*C) with free reshapes, expand in-kernel.
        wm = k_rec.shape[-2]
        rows = math.prod(k_rec.shape[:-2])
        out2 = _dc_pallas(
            mask.reshape(rows, wm).astype(jnp.float32),
            k_rec.reshape(rows, wm * ch),
            uk.reshape(rows, wm * ch),
            wm=wm, c=ch, dc_weight=dcw, exact_expand=exact_mask_expand,
            block_target_bytes=block_target_bytes)
        return out2.reshape(orig_shape)

    # Same-shape mask (or any other broadcast pattern): pure elementwise path.
    if mask.shape != k_rec.shape:
        # TODO(synk): fold arbitrary broadcast patterns into the mask
        # BlockSpec index_map instead of materializing the mask in HBM.
        mask = jnp.broadcast_to(mask, k_rec.shape)
    rows, lanes = _rows_lanes(k_rec.shape)
    out2 = _dc_pallas(
        mask.reshape(rows, lanes).astype(jnp.float32),
        k_rec.reshape(rows, lanes),
        uk.reshape(rows, lanes),
        wm=lanes, c=1, dc_weight=dcw, exact_expand=exact_mask_expand,
        block_target_bytes=block_target_bytes)
    return out2.reshape(orig_shape)


# ----------------------------------------------------------------------------
# Pure-JAX reference (mirrors the PyTorch forward exactly)
# ----------------------------------------------------------------------------
def dc_layer2c_ref(k_rec, mask, uk, *, soft=False, dc_weight=None):
    mask = mask.astype(k_rec.dtype)
    if mask.ndim < k_rec.ndim:
        mask = mask[..., None]
    masknot = 1.0 - mask
    if soft:
        w = jnp.asarray(dc_weight, k_rec.dtype)
        return masknot * k_rec * (1.0 - w) + uk * w
    return masknot * k_rec + uk


# ----------------------------------------------------------------------------
# Demo
# ----------------------------------------------------------------------------
if __name__ == "__main__":
    key = jax.random.PRNGKey(0)
    kk, ku, km, kk2, ku2, km2, kk3, ku3, km3 = jax.random.split(key, 9)

    # ---- small k-space case: (B, H, W, C=re/im), mask broadcast over C ----
    B, H, W, C = 2, 16, 16, 2
    k_rec = jax.random.normal(kk, (B, H, W, C), jnp.float32)
    uk = jax.random.normal(ku, (B, H, W, C), jnp.float32)
    mask = (jax.random.uniform(km, (B, H, W)) < 0.4).astype(jnp.float32)

    out_hard = jax.block_until_ready(dc_layer2c(k_rec, mask, uk))
    ref_hard = dc_layer2c_ref(k_rec, mask, uk)
    assert out_hard.shape == k_rec.shape and out_hard.dtype == k_rec.dtype
    assert jnp.allclose(out_hard, ref_hard, rtol=1e-6, atol=1e-6), float(
        jnp.max(jnp.abs(out_hard - ref_hard)))

    # Soft data consistency with a learned scalar dc_weight (SMEM scalar path).
    dc_w = jnp.full((1,), 0.25, jnp.float32)
    out_soft = jax.block_until_ready(
        dc_layer2c(k_rec, mask, uk, soft=True, dc_weight=dc_w))
    ref_soft = dc_layer2c_ref(k_rec, mask, uk, soft=True, dc_weight=dc_w)
    assert jnp.allclose(out_soft, ref_soft, rtol=1e-6, atol=1e-6), float(
        jnp.max(jnp.abs(out_soft - ref_soft)))

    # Same-shape mask (no unsqueeze branch) -> elementwise (c=1) path.
    mask_full = jnp.broadcast_to(mask[..., None], k_rec.shape)
    out_full = jax.block_until_ready(dc_layer2c(k_rec, mask_full, uk))
    assert jnp.allclose(out_full, ref_hard, rtol=1e-6, atol=1e-6)

    # ---- W divisible by 128: exercises the 128-wide lane tile + resident
    #      one-hot expansion path. ----
    B2, H2, W2, C2 = 3, 8, 128, 2
    k2 = jax.random.normal(kk2, (B2, H2, W2, C2), jnp.float32)
    u2 = jax.random.normal(ku2, (B2, H2, W2, C2), jnp.float32)
    m2 = (jax.random.uniform(km2, (B2, H2, W2)) < 0.3).astype(jnp.float32)
    out2 = jax.block_until_ready(dc_layer2c(k2, m2, u2))
    ref2 = dc_layer2c_ref(k2, m2, u2)
    assert jnp.allclose(out2, ref2, rtol=1e-6, atol=1e-6)

    # ---- tiny block target to exercise the cdiv row grid + padded tail ----
    B3, H3, W3, C3 = 2, 20, 16, 2               # rows = 40, tr = 16 -> 3 steps
    k3 = jax.random.normal(kk3, (B3, H3, W3, C3), jnp.float32)
    u3 = jax.random.normal(ku3, (B3, H3, W3, C3), jnp.float32)
    m3 = (jax.random.uniform(km3, (B3, H3, W3)) < 0.5).astype(jnp.float32)
    out3 = jax.block_until_ready(
        dc_layer2c(k3, m3, u3, soft=True, dc_weight=dc_w,
                   block_target_bytes=2048))
    ref3 = dc_layer2c_ref(k3, m3, u3, soft=True, dc_weight=dc_w)
    assert jnp.allclose(out3, ref3, rtol=1e-6, atol=1e-6)

    print("KERNEL_OK")
</pallas_src>

<mosaic_0001>
module attributes {stable_mosaic.version = 11 : i64} {
  func.func @_dc_kernel(%arg0: i32, %arg1: i32, %arg2: memref<32x16xf32, #tpu.memory_space<vmem>>, %arg3: memref<16x32xf32, #tpu.memory_space<vmem>>, %arg4: memref<32x32xf32, #tpu.memory_space<vmem>>, %arg5: memref<32x32xf32, #tpu.memory_space<vmem>>, %arg6: memref<32x32xf32, #tpu.memory_space<vmem>>) attributes {dimension_semantics = [#tpu.dimension_semantics<parallel>, #tpu.dimension_semantics<parallel>], iteration_bounds = array<i64: 1, 1>, scalar_prefetch = 0 : i64, scratch_operands = 0 : i64, tpu.core_type = #tpu.core_type<tc>, window_params = [{transform_indices = @transform_0, window_bounds = array<i64: 32, 16>}, {pipeline_mode = #tpu.pipeline_mode<synchronous>, transform_indices = @transform_1, window_bounds = array<i64: 16, 32>}, {transform_indices = @transform_2, window_bounds = array<i64: 32, 32>}, {transform_indices = @transform_3, window_bounds = array<i64: 32, 32>}, {transform_indices = @transform_4, window_bounds = array<i64: 32, 32>}]} {
    %c0 = arith.constant 0 : index
    %c0_0 = arith.constant 0 : index
    %0 = vector.load %arg2[%c0, %c0_0] : memref<32x16xf32, #tpu.memory_space<vmem>>, vector<32x16xf32>
    %cst = arith.constant 1.000000e+00 : f32
    %1 = vector.broadcast %cst : f32 to vector<32x16xf32>
    %2 = arith.subf %1, %0 : vector<32x16xf32>
    %c0_1 = arith.constant 0 : index
    %c0_2 = arith.constant 0 : index
    %3 = vector.load %arg3[%c0_1, %c0_2] : memref<16x32xf32, #tpu.memory_space<vmem>>, vector<16x32xf32>
    %cst_3 = arith.constant dense<0.000000e+00> : vector<32x32xf32>
    %4 = tpu.matmul %2, %3, %cst_3 {dimension_numbers = #tpu.dot_dimension_numbers<[1], [0], [0], [1], [0, 0, 1, 1], [], []>} : vector<32x16xf32>, vector<16x32xf32>, vector<32x32xf32> -> vector<32x32xf32>
    %c0_4 = arith.constant 0 : index
    %c0_5 = arith.constant 0 : index
    %5 = vector.load %arg4[%c0_4, %c0_5] : memref<32x32xf32, #tpu.memory_space<vmem>>, vector<32x32xf32>
    %c0_6 = arith.constant 0 : index
    %c0_7 = arith.constant 0 : index
    %6 = vector.load %arg5[%c0_6, %c0_7] : memref<32x32xf32, #tpu.memory_space<vmem>>, vector<32x32xf32>
    %7 = arith.mulf %4, %5 : vector<32x32xf32>
    %8 = arith.addf %7, %6 : vector<32x32xf32>
    %c0_8 = arith.constant 0 : index
    %c0_9 = arith.constant 0 : index
    %9 = vector.load %arg6[%c0_8, %c0_9] : memref<32x32xf32, #tpu.memory_space<vmem>>, vector<32x32xf32>
    tpu.vector_store %arg6[%c0_8, %c0_9], %8 {strides = array<i32>} : memref<32x32xf32, #tpu.memory_space<vmem>>, vector<32x32xf32>,
    return
  }
  func.func @transform_0(%arg0: i32, %arg1: i32) -> (i32, i32) {
    %c0_i32 = arith.constant 0 : i32
    return %arg0, %arg1 : i32, i32
  }
  func.func @transform_1(%arg0: i32, %arg1: i32) -> (i32, i32) {
    %c0_i32 = arith.constant 0 : i32
    %c0_i32_0 = arith.constant 0 : i32
    %c0_i32_1 = arith.constant 0 : i32
    return %c0_i32, %c0_i32_0 : i32, i32
  }
  func.func @transform_2(%arg0: i32, %arg1: i32) -> (i32, i32) {
    %c0_i32 = arith.constant 0 : i32
    return %arg0, %arg1 : i32, i32
  }
  func.func @transform_3(%arg0: i32, %arg1: i32) -> (i32, i32) {
    %c0_i32 = arith.constant 0 : i32
    return %arg0, %arg1 : i32, i32
  }
  func.func @transform_4(%arg0: i32, %arg1: i32) -> (i32, i32) {
    %c0_i32 = arith.constant 0 : i32
    return %arg0, %arg1 : i32, i32
  }
}

</mosaic_0001>

<bundles_post_ra>
// kernel: tpu_custom_call.1
= control target key start
LH: loop header
LB: loop body
LE: loop exit
PB: predicated region body
PF: predicated region fallthrough
CT: control target
= control target key end

     0   :  { %9 = vsyncpa [#allocation3], 0  ;;  %s345_s0 = inlined_call_operand.vmem [shape: f32[32,16], index: 0, kind: input, shape index: {}]   ;;  %s346_s1 = inlined_call_operand.vmem [shape: f32[16,32], index: 1, kind: input, shape index: {}]   ;;  %s347_s2 = inlined_call_operand.vmem [shape: f32[32,32], index: 2, kind: input, shape index: {}]   ;;  %s348_s3 = inlined_call_operand.hbm [shape: f32[32,32], index: 3, kind: input, shape index: {}]   ;;  %s349_s4 = inlined_call_operand.hbm [shape: f32[32,32], index: 4, kind: output, shape index: {}]  }
   0x1   :  { %10 = vsyncpa [#allocation4], 0  ;;  %s256_s15 = smov [#allocation2]   ;;  %s208_s19 = scalar_lea.hbm %s348_s3, 512 }
   0x2   :  { %s22_s16 = sshll.u32 %s256_s15, 4  ;;  %p209_p0 = scmp.ne.s32.totalorder %s348_s3, %s208_s19  ;;  %s23_s16 = int_to_ptr.vmem [resolvable:$true] %s22_s16 }
   0x3   :  { %p212_p1 = scmp.lt.u32.totalorder %s208_s19, %s348_s3 }
   0x5   :  { %p214_p2 = pnand %p212_p1, %p209_p0 }
   0x7   :  { %217 = shalt.err (!%p214_p2)
}
   0x8   :  { %s218_s24 = scalar_lea.vmem %s23_s16, 512  ;;  %p223_p4 = scmp.lt.s32.totalorder %s23_s16, %s23_s16 }
   0x9   :  { %p219_p3 = scmp.ne.s32.totalorder %s23_s16, %s218_s24  ;;  %p224_p5 = scmp.lt.s32.totalorder %s218_s24, %s218_s24 }
   0xb   :  { %p225_p6 = por %p224_p5, %p223_p4 }
   0xd   :  { %p226_p7 = pnand %p225_p6, %p219_p3 }
   0xf   :  { %229 = shalt.err (!%p226_p7)
}
  0x10   :  { %s257_s25 = smov 128   ;;  %s258_s26 = smov 8  }
  0x11   :  { %28 = dma.hbm_to_vmem [thread:$0]  %s348_s3, 512, %s23_s16, [#allocation3], %s257_s25, %s257_s25, %s258_s26  }
  0x12   :  { %252 = dma.done.wait [#allocation3], 512  }
  0x13   :  { %253 = vsyncadd [#allocation3], 4294966784  ;;  %v40_v0 = vld [vmem:[%s346_s1] sm:$0xff]  ;;  %v41_v1 = vld [vmem:[%s346_s1 + $0x8] sm:$0xff]  ;;  %vm42_vm0 = vcmask 130048   ;;  %s259_s20 = smov [#allocation5]  }
  0x14   :  { %v32_v2 = vld [vmem:[%s345_s0] sm:$0xff]  ;;  %v198_v3 = vpack.c.bf16 %v41_v1, %v40_v0  ;;  %v34_v5 = vld [vmem:[%s345_s0 + $0x10] sm:$0xff]  ;;  %v33_v6 = vld [vmem:[%s345_s0 + $0x8] sm:$0xff]  ;;  %s166_s21 = sshll.u32 %s259_s20, 4  ;;  %vm156_vm1 = vcmask 261120   ;;  %s167_s21 = int_to_ptr.vmem [resolvable:$true] %s166_s21 }
  0x15   :  { %v36_v4 = vsub.f32 1.0, %v32_v2  ;;  %v35_v7 = vld [vmem:[%s345_s0 + $0x18] sm:$0xff]  ;;  %v38_v8 = vsub.f32 1.0, %v34_v5  ;;  %v37_v9 = vsub.f32 1.0, %v33_v6  ;;  %v141_v11 = vld [vmem:[%s347_s2 + $0x8] sm:$0xff]  ;;  %v140_v13 = vld [vmem:[%s347_s2] sm:$0xff]  ;;  %p235_p9 = scmp.lt.s32.totalorder %s167_s21, %s167_s21 }
  0x16   :  { %199 = vmatprep.subr.bf16.mxu0 %v198_v3  ;;  %202 = vmatprep.subr.bf16.mxu1 %v198_v3  ;;  %v39_v10 = vsub.f32 1.0, %v35_v7  ;;  %v143_v12 = vld [vmem:[%s347_s2 + $0x18] sm:$0xff]  ;;  %v142_v14 = vld [vmem:[%s347_s2 + $0x10] sm:$0xff]  ;;  %v145_v16 = vld [vmem:[#allocation2 + $0x8] sm:$0xff]  ;;  %s230_s2 = scalar_lea.vmem %s167_s21, 512 }
  0x17   :  { %201 = vmatpush3.bf16.msra.mxu0 %v198_v3  ;;  %203 = vmatpush3.bf16.msra.mxu1 %v198_v3  ;;  %v147_v18 = vld [vmem:[#allocation2 + $0x18] sm:$0xff]  ;;  %v144_v22 = vld [vmem:[#allocation2] sm:$0xff]  ;;  %v146_v24 = vld [vmem:[#allocation2 + $0x10] sm:$0xff]  ;;  %p231_p8 = scmp.ne.s32.totalorder %s167_s21, %s230_s2  ;;  %p236_p10 = scmp.lt.s32.totalorder %s230_s2, %s230_s2 }
  0x18   :  { %192 = vmatprep.mubr.msk.f32.mxu0 %vm42_vm0, %v36_v4  ;;  %195 = vmatprep.mubr.msk.f32.mxu1 %vm42_vm0, %v38_v8 }
  0x19   :  { %p237_p11 = por %p236_p10, %p235_p9 }
  0x1a   :  { %193 = vmatmul.mubr.msk.f32.vlgmr.msra.gmra.mrb[0].mxu0 %vm42_vm0, %v37_v9  ;;  %196 = vmatmul.mubr.msk.f32.vlgmr.msra.gmra.mrb[0].mxu1 %vm42_vm0, %v39_v10 }
  0x1b   :  { %p238_p12 = pnand %p237_p11, %p231_p8 }
  0xed   :  { %v194_v15 = vpop.f32.mrb[0].mxu0  ;;  %v197_v17 = vpop.f32.mrb[0].mxu1 }
  0xee   :  { %v149_v19 = vmul.f32 %v194_v15, %v141_v11  ;;  %v151_v20 = vmul.f32 %v197_v17, %v143_v12  ;;  %v121_v21 = vpop.f32.mrb[1].mxu0  ;;  %v131_v23 = vpop.f32.mrb[1].mxu1 }
  0xef   :  { %v148_v25 = vmul.f32 %v140_v13, %v121_v21  ;;  %v150_v26 = vmul.f32 %v142_v14, %v131_v23 }
  0xf0   :  { %v153_v27 = vadd.f32 %v149_v19, %v145_v16  ;;  %v155_v28 = vadd.f32 %v151_v20, %v147_v18 }
  0xf1   :  { %v152_v29 = vadd.f32 %v148_v25, %v144_v22  ;;  %v154_v30 = vadd.f32 %v150_v26, %v146_v24 }
  0xf2   :  { %158 = vst.msk [vmem:[#allocation5 + $0x8] sm:$0xff] %vm156_vm1, %v153_v27  ;;  %160 = vst.msk [vmem:[#allocation5 + $0x18] sm:$0xff] %vm156_vm1, %v155_v28 }
  0xf3   :  { %157 = vst.msk [vmem:[#allocation5] sm:$0xff] %vm156_vm1, %v152_v29  ;;  %159 = vst.msk [vmem:[#allocation5 + $0x10] sm:$0xff] %vm156_vm1, %v154_v30 }
  0xf4   :  { %241 = shalt.err (!%p238_p12)
}
  0xf5   :  { %s242_s24 = scalar_lea.hbm %s349_s4, 512 }
  0xf6   :  { %p243_p13 = scmp.ne.s32.totalorder %s349_s4, %s242_s24  ;;  %p246_p0 = scmp.lt.u32.totalorder %s242_s24, %s349_s4 }
  0xf8   :  { %p248_p1 = pnand %p246_p0, %p243_p13 }
  0xfa   :  { %251 = shalt.err (!%p248_p1)
}
  0xfb   :  { %172 = dma.vmem_to_hbm [thread:$0]  %s167_s21, 512, %s349_s4, [#allocation4], %s257_s25, %s257_s25, %s258_s26  }
  0xfc   :  { %254 = dma.done.wait [#allocation4], 512  }
  0xfd   :  { %255 = vsyncadd [#allocation4], 4294966784 }
  0xfe   :  { %176 = vsyncpa [#allocation3], 1 }
  0xff   :  { %177 = vsyncpa [#allocation4], 1 }

</bundles_post_ra>
